<compile_context>
chip_gen: v5e
topology: v5e:2x2
jax: 0.10.0
libtpu: 0.0.40
codegen_flags: <defaults>
</compile_context>

<pallas_src>
import jax
import jax.numpy as jnp
from jax.experimental import pallas as pl
from jax.experimental.pallas import tpu as pltpu


def mlp_kernel(x_ref, w1_ref, b1_ref, w2_ref, b2_ref, x2_ref, x3_ref):
    # x: (B, 10), w1: (10, 50), b1: (1, 50), w2: (50, 10), b2: (1, 10)
    x = x_ref[...]
    # linear1: x2 = x @ w1 + b1
    h = jnp.dot(x, w1_ref[...], preferred_element_type=jnp.float32) + b1_ref[...]
    x2_ref[...] = h.astype(x2_ref.dtype)
    # linear2: x3 = x2 @ w2 + b2  (h kept in registers; x2 dtype is f32 so
    # this is identical to re-reading the stored x2)
    o = jnp.dot(h, w2_ref[...], preferred_element_type=jnp.float32) + b2_ref[...]
    x3_ref[...] = o.astype(x3_ref.dtype)


def mlp_forward(x, w1, b1, w2, b2):
    B = x.shape[0]
    N1 = w1.shape[1]  # 50
    N2 = w2.shape[1]  # 10
    vmem_spec = pl.BlockSpec(memory_space=pltpu.MemorySpace.VMEM)
    # Gridless call: every operand is a single full-array VMEM block, so no
    # pipelining scaffolding is emitted for this tiny, overhead-bound problem.
    return pl.pallas_call(
        mlp_kernel,
        out_shape=(
            jax.ShapeDtypeStruct((B, N1), jnp.float32),
            jax.ShapeDtypeStruct((B, N2), jnp.float32),
        ),
        in_specs=[vmem_spec] * 5,
        out_specs=(vmem_spec, vmem_spec),
    )(x, w1, b1, w2, b2)


if __name__ == "__main__":
    key = jax.random.PRNGKey(0)
    k_x, k_w1, k_b1, k_w2, k_b2 = jax.random.split(key, 5)

    B, IN1, OUT1, OUT2 = 64, 10, 50, 10

    x1 = jax.random.normal(k_x, (B, IN1), dtype=jnp.float32)

    # Deterministic init mimicking torch.nn.Linear (uniform(-1/sqrt(fan_in), 1/sqrt(fan_in)))
    bound1 = 1.0 / jnp.sqrt(IN1)
    w1_t = jax.random.uniform(k_w1, (OUT1, IN1), minval=-bound1, maxval=bound1)  # torch layout (out,in)
    b1 = jax.random.uniform(k_b1, (OUT1,), minval=-bound1, maxval=bound1)
    bound2 = 1.0 / jnp.sqrt(OUT1)
    w2_t = jax.random.uniform(k_w2, (OUT2, OUT1), minval=-bound2, maxval=bound2)
    b2 = jax.random.uniform(k_b2, (OUT2,), minval=-bound2, maxval=bound2)

    # Pre-transpose to (in, out) and make biases 2D (1-D operands hit TPU
    # layout restrictions; 2D (1, N) broadcasts cleanly).
    w1 = w1_t.T
    w2 = w2_t.T
    b1_2d = b1.reshape(1, OUT1)
    b2_2d = b2.reshape(1, OUT2)

    x2, x3 = mlp_forward(x1, w1, b1_2d, w2, b2_2d)
    jax.block_until_ready((x2, x3))

    # Reference check in plain JAX.
    x2_ref = x1 @ w1 + b1
    x3_ref = x2_ref @ w2 + b2
    assert jnp.allclose(x2, x2_ref, atol=1e-5, rtol=1e-5)
    assert jnp.allclose(x3, x3_ref, atol=1e-5, rtol=1e-5)

    print("KERNEL_OK")
</pallas_src>

<mosaic_0001>
module attributes {stable_mosaic.version = 11 : i64} {
  func.func @mlp_kernel(%arg0: memref<64x10xf32, #tpu.memory_space<vmem>>, %arg1: memref<10x50xf32, #tpu.memory_space<vmem>>, %arg2: memref<1x50xf32, #tpu.memory_space<vmem>>, %arg3: memref<50x10xf32, #tpu.memory_space<vmem>>, %arg4: memref<1x10xf32, #tpu.memory_space<vmem>>, %arg5: memref<64x50xf32, #tpu.memory_space<vmem>>, %arg6: memref<64x10xf32, #tpu.memory_space<vmem>>) attributes {dimension_semantics = [], scalar_prefetch = 0 : i64, scratch_operands = 0 : i64, tpu.core_type = #tpu.core_type<tc>} {
    %c0 = arith.constant 0 : index
    %c0_0 = arith.constant 0 : index
    %0 = vector.load %arg0[%c0, %c0_0] : memref<64x10xf32, #tpu.memory_space<vmem>>, vector<64x10xf32>
    %c0_1 = arith.constant 0 : index
    %c0_2 = arith.constant 0 : index
    %1 = vector.load %arg1[%c0_1, %c0_2] : memref<10x50xf32, #tpu.memory_space<vmem>>, vector<10x50xf32>
    %cst = arith.constant dense<0.000000e+00> : vector<64x50xf32>
    %2 = tpu.matmul %0, %1, %cst {dimension_numbers = #tpu.dot_dimension_numbers<[1], [0], [0], [1], [0, 0, 1, 1], [], []>} : vector<64x10xf32>, vector<10x50xf32>, vector<64x50xf32> -> vector<64x50xf32>
    %c0_3 = arith.constant 0 : index
    %c0_4 = arith.constant 0 : index
    %3 = vector.load %arg2[%c0_3, %c0_4] : memref<1x50xf32, #tpu.memory_space<vmem>>, vector<1x50xf32>
    %4 = vector.broadcast %3 : vector<1x50xf32> to vector<64x50xf32>
    %5 = arith.addf %2, %4 : vector<64x50xf32>
    %c0_5 = arith.constant 0 : index
    %c0_6 = arith.constant 0 : index
    %6 = vector.load %arg5[%c0_5, %c0_6] : memref<64x50xf32, #tpu.memory_space<vmem>>, vector<64x50xf32>
    tpu.vector_store %arg5[%c0_5, %c0_6], %5 {strides = array<i32>} : memref<64x50xf32, #tpu.memory_space<vmem>>, vector<64x50xf32>,
    %c0_7 = arith.constant 0 : index
    %c0_8 = arith.constant 0 : index
    %7 = vector.load %arg3[%c0_7, %c0_8] : memref<50x10xf32, #tpu.memory_space<vmem>>, vector<50x10xf32>
    %cst_9 = arith.constant dense<0.000000e+00> : vector<64x10xf32>
    %8 = tpu.matmul %5, %7, %cst_9 {dimension_numbers = #tpu.dot_dimension_numbers<[1], [0], [0], [1], [0, 0, 1, 1], [], []>} : vector<64x50xf32>, vector<50x10xf32>, vector<64x10xf32> -> vector<64x10xf32>
    %c0_10 = arith.constant 0 : index
    %c0_11 = arith.constant 0 : index
    %9 = vector.load %arg4[%c0_10, %c0_11] : memref<1x10xf32, #tpu.memory_space<vmem>>, vector<1x10xf32>
    %10 = vector.broadcast %9 : vector<1x10xf32> to vector<64x10xf32>
    %11 = arith.addf %8, %10 : vector<64x10xf32>
    %c0_12 = arith.constant 0 : index
    %c0_13 = arith.constant 0 : index
    %12 = vector.load %arg6[%c0_12, %c0_13] : memref<64x10xf32, #tpu.memory_space<vmem>>, vector<64x10xf32>
    tpu.vector_store %arg6[%c0_12, %c0_13], %11 {strides = array<i32>} : memref<64x10xf32, #tpu.memory_space<vmem>>, vector<64x10xf32>,
    return
  }
}

</mosaic_0001>

<bundles_post_ra>
// kernel: tpu_custom_call.1
= control target key start
LH: loop header
LB: loop body
LE: loop exit
PB: predicated region body
PF: predicated region fallthrough
CT: control target
= control target key end

     0   :  { %vm61_vm0 = vcmask 1041408   ;;  %vm36_vm1 = vcmask 80896   ;;  %vm106_vm2 = vcmask 408576   ;;  %s415_s1 = inlined_call_operand.vmem [shape: f32[10,50], index: 1, kind: input, shape index: {}]   ;;  %s416_s0 = inlined_call_operand.vmem [shape: f32[64,10], index: 0, kind: input, shape index: {}]   ;;  %s417_s2 = inlined_call_operand.vmem [shape: f32[1,50], index: 2, kind: input, shape index: {}]   ;;  %s418_s3 = inlined_call_operand.vmem [shape: f32[50,10], index: 3, kind: input, shape index: {}]   ;;  %s419_s4 = inlined_call_operand.vmem [shape: f32[1,10], index: 4, kind: input, shape index: {}]   ;;  %s420_s5 = inlined_call_operand.vmem [shape: f32[64,50], index: 5, kind: output, shape index: {0}]   ;;  %s421_s6 = inlined_call_operand.vmem [shape: f32[64,10], index: 6, kind: output, shape index: {1}]  }
   0x1   :  { %v31_v0 = vld [vmem:[%s415_s1 + $0x8] sm:$0x3]  ;;  %v30_v1 = vld [vmem:[%s415_s1] sm:$0xff]  ;;  %v121_v4 = vld [vmem:[%s418_s3 + $0x30] sm:$0x3] }
   0x2   :  { %210 = vmatpush.msk.msra.mxu0 %vm61_vm0, %v31_v0  ;;  %v22_v2 = vld [vmem:[%s416_s0] sm:$0xff]  ;;  %228 = vmatpush.msk.msra.mxu3 %vm61_vm0, %v31_v0  ;;  %v27_v3 = vld [vmem:[%s416_s0 + $0x28] sm:$0xff]  ;;  %v118_v8 = vld [vmem:[%s418_s3 + $0x18] sm:$0xff] }
   0x3   :  { %v120_v5 = vld [vmem:[%s418_s3 + $0x28] sm:$0xff]  ;;  %219 = vmatpush.msk.msra.mxu1 %vm61_vm0, %v121_v4  ;;  %230 = vmatpush.msk.msra.mxu2 %vm61_vm0, %v121_v4  ;;  %v119_v6 = vld [vmem:[%s418_s3 + $0x20] sm:$0xff]  ;;  %v28_v9 = vld [vmem:[%s416_s0 + $0x30] sm:$0xff] }
   0x4   :  { %80 = vmatpush.msra.mxu0 %v30_v1  ;;  %229 = vmatpush.msra.mxu3 %v30_v1  ;;  %v23_v7 = vld [vmem:[%s416_s0 + $0x8] sm:$0xff]  ;;  %v117_v10 = vld [vmem:[%s418_s3 + $0x10] sm:$0xff]  ;;  %v29_v12 = vld [vmem:[%s416_s0 + $0x38] sm:$0xff] }
   0x5   :  { %211 = vmatmul.msk.f32.vlgmr.msra.gmra.mxu0 %vm36_vm1, %v22_v2  ;;  %216 = vmatmul.msk.f32.vlgmr.msra.gmra.mxu3 %vm36_vm1, %v27_v3  ;;  %v24_v11 = vld [vmem:[%s416_s0 + $0x10] sm:$0xff]  ;;  %v25_v13 = vld [vmem:[%s416_s0 + $0x18] sm:$0xff]  ;;  %v26_v14 = vld [vmem:[%s416_s0 + $0x20] sm:$0xff] }
   0x6   :  { %163 = vmatpush.msra.mxu1 %v120_v5  ;;  %231 = vmatpush.msra.mxu2 %v120_v5  ;;  %v116_v15 = vld [vmem:[%s418_s3 + $0x8] sm:$0xff]  ;;  %v115_v16 = vld [vmem:[%s418_s3] sm:$0xff] }
   0x7   :  { %v237_v17 = vld [vmem:[%s417_s2] ss:$0 sm:$0xff] }
   0x8   :  { %164 = vmatpush.msra.mxu1 %v119_v6  ;;  %232 = vmatpush.msra.mxu2 %v119_v6  ;;  %v238_v34 = vld [vmem:[%s419_s4] ss:$0 sm:$0xff] }
   0xa   :  { %165 = vmatpush.msra.mxu1 %v118_v8  ;;  %233 = vmatpush.msra.mxu2 %v118_v8 }
   0xc   :  { %166 = vmatpush.msra.mxu1 %v117_v10  ;;  %234 = vmatpush.msra.mxu2 %v117_v10 }
   0xd   :  { %212 = vmatmul.msk.f32.gmra.mxu0 %vm36_vm1, %v23_v7  ;;  %217 = vmatmul.msk.f32.gmra.mxu3 %vm36_vm1, %v28_v9 }
   0xe   :  { %167 = vmatpush.msra.mxu1 %v116_v15  ;;  %235 = vmatpush.msra.mxu2 %v116_v15 }
  0x10   :  { %168 = vmatpush.msra.mxu1 %v115_v16  ;;  %236 = vmatpush.msra.mxu2 %v115_v16 }
  0x15   :  { %213 = vmatmul.msk.f32.gmra.mxu0 %vm36_vm1, %v24_v11  ;;  %218 = vmatmul.msk.f32.gmra.mxu3 %vm36_vm1, %v29_v12 }
  0x1d   :  { %214 = vmatmul.msk.f32.gmra.mxu0 %vm36_vm1, %v25_v13 }
  0x25   :  { %215 = vmatmul.msk.f32.gmra.mxu0 %vm36_vm1, %v26_v14 }
  0x82   :  { %v82_v18 = vpop.f32.mrf.mxu0 }
  0x83   :  { %v83_v19 = vadd.f32 %v237_v17, %v82_v18 }
  0x85   :  { %107 = vst.msk [vmem:[%s420_s5] sm:$0xff] %vm106_vm2, %v83_v19  ;;  %220 = vmatmul.msk.f32.vlgmr.msra.gmra.mxu1 %vm106_vm2, %v83_v19 }
  0x88   :  { %v97_v20 = vpop.f32.mrf.mxu3 }
  0x89   :  { %v98_v22 = vadd.f32 %v237_v17, %v97_v20 }
  0x8a   :  { %v85_v21 = vpop.f32.mrf.mxu0 }
  0x8b   :  { %v86_v23 = vadd.f32 %v237_v17, %v85_v21  ;;  %112 = vst.msk [vmem:[%s420_s5 + $0x28] sm:$0xff] %vm106_vm2, %v98_v22 }
  0x8d   :  { %108 = vst.msk [vmem:[%s420_s5 + $0x8] sm:$0xff] %vm106_vm2, %v86_v23  ;;  %221 = vmatmul.msk.f32.gmra.mxu1 %vm106_vm2, %v86_v23 }
  0x90   :  { %v100_v24 = vpop.f32.mrf.mxu3 }
  0x91   :  { %v101_v26 = vadd.f32 %v237_v17, %v100_v24 }
  0x92   :  { %v88_v25 = vpop.f32.mrf.mxu0 }
  0x93   :  { %v89_v27 = vadd.f32 %v237_v17, %v88_v25  ;;  %113 = vst.msk [vmem:[%s420_s5 + $0x30] sm:$0xff] %vm106_vm2, %v101_v26 }
  0x95   :  { %109 = vst.msk [vmem:[%s420_s5 + $0x10] sm:$0xff] %vm106_vm2, %v89_v27  ;;  %222 = vmatmul.msk.f32.gmra.mxu1 %vm106_vm2, %v89_v27 }
  0x98   :  { %v103_v28 = vpop.f32.mrf.mxu3 }
  0x99   :  { %v104_v30 = vadd.f32 %v237_v17, %v103_v28 }
  0x9a   :  { %v91_v29 = vpop.f32.mrf.mxu0 }
  0x9b   :  { %v92_v31 = vadd.f32 %v237_v17, %v91_v29  ;;  %114 = vst.msk [vmem:[%s420_s5 + $0x38] sm:$0xff] %vm106_vm2, %v104_v30 }
  0x9d   :  { %110 = vst.msk [vmem:[%s420_s5 + $0x18] sm:$0xff] %vm106_vm2, %v92_v31  ;;  %223 = vmatmul.msk.f32.gmra.mxu1 %vm106_vm2, %v92_v31 }
  0xa2   :  { %v94_v32 = vpop.f32.mrf.mxu0 }
  0xa3   :  { %v95_v33 = vadd.f32 %v237_v17, %v94_v32 }
  0xa5   :  { %111 = vst.msk [vmem:[%s420_s5 + $0x20] sm:$0xff] %vm106_vm2, %v95_v33  ;;  %224 = vmatmul.msk.f32.vlgmr.msra.gmra.mxu2 %vm106_vm2, %v95_v33 }
  0xad   :  { %225 = vmatmul.msk.f32.gmra.mxu2 %vm106_vm2, %v98_v22 }
  0xb5   :  { %226 = vmatmul.msk.f32.gmra.mxu2 %vm106_vm2, %v101_v26 }
  0xbd   :  { %227 = vmatmul.msk.f32.gmra.mxu2 %vm106_vm2, %v104_v30 }
 0x102   :  { %v170_v35 = vpop.f32.mrf.mxu1 }
 0x103   :  { %v171_v36 = vadd.f32 %v238_v34, %v170_v35 }
 0x105   :  { %194 = vst.msk [vmem:[%s421_s6] sm:$0xff] %vm36_vm1, %v171_v36 }
 0x10a   :  { %v173_v37 = vpop.f32.mrf.mxu1 }
 0x10b   :  { %v174_v38 = vadd.f32 %v238_v34, %v173_v37 }
 0x10d   :  { %195 = vst.msk [vmem:[%s421_s6 + $0x8] sm:$0xff] %vm36_vm1, %v174_v38 }
 0x112   :  { %v176_v39 = vpop.f32.mrf.mxu1 }
 0x113   :  { %v177_v40 = vadd.f32 %v238_v34, %v176_v39 }
 0x115   :  { %196 = vst.msk [vmem:[%s421_s6 + $0x10] sm:$0xff] %vm36_vm1, %v177_v40 }
 0x11a   :  { %v179_v41 = vpop.f32.mrf.mxu1 }
 0x11b   :  { %v180_v42 = vadd.f32 %v238_v34, %v179_v41 }
 0x11d   :  { %197 = vst.msk [vmem:[%s421_s6 + $0x18] sm:$0xff] %vm36_vm1, %v180_v42 }
 0x128   :  { %v182_v43 = vpop.f32.mrf.mxu2 }
 0x129   :  { %v183_v44 = vadd.f32 %v238_v34, %v182_v43 }
 0x12b   :  { %198 = vst.msk [vmem:[%s421_s6 + $0x20] sm:$0xff] %vm36_vm1, %v183_v44 }
 0x130   :  { %v185_v45 = vpop.f32.mrf.mxu2 }
 0x131   :  { %v186_v46 = vadd.f32 %v238_v34, %v185_v45 }
 0x133   :  { %199 = vst.msk [vmem:[%s421_s6 + $0x28] sm:$0xff] %vm36_vm1, %v186_v46 }
 0x138   :  { %v188_v47 = vpop.f32.mrf.mxu2 }
 0x139   :  { %v189_v48 = vadd.f32 %v238_v34, %v188_v47 }
 0x13b   :  { %200 = vst.msk [vmem:[%s421_s6 + $0x30] sm:$0xff] %vm36_vm1, %v189_v48 }
 0x140   :  { %v191_v49 = vpop.f32.mrf.mxu2 }
 0x141   :  { %v192_v50 = vadd.f32 %v238_v34, %v191_v49 }
 0x143   :  { %201 = vst.msk [vmem:[%s421_s6 + $0x38] sm:$0xff] %vm36_vm1, %v192_v50 }

</bundles_post_ra>
